<compile_context>
chip_gen: v6e
topology: v6e:2x2x1
jax: 0.10.0
libtpu: 0.0.40
codegen_flags: <defaults>
</compile_context>

<pallas_src>
import functools

import jax
import jax.numpy as jnp
from jax.experimental import pallas as pl
from jax.experimental.pallas import tpu as pltpu


# ----------------------------------------------------------------------------
# helpers
# ----------------------------------------------------------------------------
def _round_up(x, m):
    return ((x + m - 1) // m) * m


def _pick_tile(n, target, mult=128):
    """Largest multiple of `mult` <= target that divides n (n % mult == 0)."""
    t = min(n, max(mult, (target // mult) * mult))
    while n % t != 0:
        t -= mult
    return t


# ----------------------------------------------------------------------------
# Phase 1: wide feature projection  MSG = H @ [W_0 | ... | W_{R-1} | W_self]
# ----------------------------------------------------------------------------
def _project_kernel(h_ref, w_ref, msg_ref):
    msg_ref[...] = jnp.dot(h_ref[...], w_ref[...],
                           preferred_element_type=jnp.float32
                           ).astype(msg_ref.dtype)


def _project_messages(h_bf16, w_wide_bf16, *, d_pad, r_tot,
                      tile_m=512, col_target=1024):
    N, D_in = h_bf16.shape
    Dw = w_wide_bf16.shape[1]              # = r_tot * d_pad
    tm = _pick_tile(N, tile_m)

    # Column tile = a group of whole relation blocks (keeps the resident W
    # slice bounded on v7x's 64 MiB VMEM instead of loading all R at once).
    g = max(1, col_target // d_pad)
    while r_tot % g != 0:
        g -= 1
    ct = g * d_pad

    return pl.pallas_call(
        _project_kernel,
        out_shape=jax.ShapeDtypeStruct((N, Dw), jnp.bfloat16),
        grid_spec=pltpu.PrefetchScalarGridSpec(
            num_scalar_prefetch=0,
            grid=(N // tm, Dw // ct),
            in_specs=[
                pl.BlockSpec((tm, D_in), lambda i, j: (i, 0)),   # H row tile
                pl.BlockSpec((D_in, ct), lambda i, j: (0, j)),   # W column group
            ],
            out_specs=pl.BlockSpec((tm, ct), lambda i, j: (i, j)),
        ),
        compiler_params=pltpu.CompilerParams(
            dimension_semantics=("parallel", "parallel"),
            vmem_limit_bytes=56 * 1024 * 1024),
        cost_estimate=pl.CostEstimate(
            flops=2 * N * D_in * Dw,
            transcendentals=0,
            bytes_accessed=2 * (N * D_in * (Dw // ct) + D_in * Dw + N * Dw)),
    )(h_bf16, w_wide_bf16)


# ----------------------------------------------------------------------------
# Phase 2: tiled relational aggregation
# grid = (N//TM, R, N//TK); row axis parallel, reduction axes (r, k) last.
# ----------------------------------------------------------------------------
def _aggregate_body(a_ref, msg_ref, invdeg_ref, self_ref, o_ref, acc_ref,
                    apply_relu):
    r = pl.program_id(1)
    k = pl.program_id(2)

    @pl.when((r == 0) & (k == 0))
    def _():
        acc_ref[...] = jnp.zeros_like(acc_ref)

    # acc[i] += A_r[i, k] @ MSG_r[k]  (int8 0/1 adjacency, cast is exact)
    a = a_ref[...].astype(jnp.bfloat16)
    acc_ref[...] += jnp.dot(a, msg_ref[...],
                            preferred_element_type=jnp.float32)

    @pl.when((r == pl.num_programs(1) - 1) & (k == pl.num_programs(2) - 1))
    def _():
        out = acc_ref[...] * invdeg_ref[...]         # exact f32 1/deg row scale
        if self_ref is not None:
            out = out + self_ref[...].astype(jnp.float32)
        if apply_relu:
            out = jnp.maximum(out, 0.0)
        o_ref[...] = out.astype(o_ref.dtype)


def _make_aggregate_kernel(self_loop, apply_relu):
    if self_loop:
        def kernel(a_ref, msg_ref, invdeg_ref, self_ref, o_ref, acc_ref):
            _aggregate_body(a_ref, msg_ref, invdeg_ref, self_ref, o_ref,
                            acc_ref, apply_relu)
    else:
        def kernel(a_ref, msg_ref, invdeg_ref, o_ref, acc_ref):
            _aggregate_body(a_ref, msg_ref, invdeg_ref, None, o_ref,
                            acc_ref, apply_relu)
    return kernel


def rgcn_layer_pallas(adj_i8, inv_deg, w_rel, w_self, h, *, self_loop=True,
                      apply_relu=True, out_dtype=jnp.float32,
                      tile_m=512, tile_k=1024):
    """One RGCN message-passing layer on a dense relational 0/1 graph.

    adj_i8 : (R, N, N) int8 unnormalized 0/1 adjacency
    inv_deg: (N,) f32 per-node 1/deg row scale
    """
    R, N, _ = adj_i8.shape
    D_in = h.shape[1]
    D_out = w_rel.shape[2]

    # Pad output-feature dim to a lane-dense multiple of 128 and N to a
    # multiple of 128 so every tile is (8,128)-aligned.
    D_pad = _round_up(D_out, 128)
    N_pad = _round_up(N, 128)
    if D_pad != D_out:
        w_rel = jnp.pad(w_rel, ((0, 0), (0, 0), (0, D_pad - D_out)))
        w_self = jnp.pad(w_self, ((0, 0), (0, D_pad - D_out)))
    if N_pad != N:
        adj_i8 = jnp.pad(adj_i8, ((0, 0), (0, N_pad - N), (0, N_pad - N)))
        h = jnp.pad(h, ((0, N_pad - N), (0, 0)))
        inv_deg = jnp.pad(inv_deg, ((0, N_pad - N),), constant_values=1.0)

    h_bf16 = h.astype(jnp.bfloat16)
    inv_deg2d = inv_deg.reshape(N_pad, 1).astype(jnp.float32)

    # ---- Phase 1: one wide projection (relations + optional self-loop). ----
    w_wide = jnp.transpose(w_rel, (1, 0, 2)).reshape(D_in, R * D_pad)
    if self_loop:
        w_wide = jnp.concatenate([w_wide, w_self], axis=1)
    r_tot = R + (1 if self_loop else 0)
    msg_wide = _project_messages(h_bf16, w_wide.astype(jnp.bfloat16),
                                 d_pad=D_pad, r_tot=r_tot)

    # ---- Phase 2: tiled aggregation over relations / neighbour columns. ----
    TM = _pick_tile(N_pad, tile_m)
    TK = _pick_tile(N_pad, tile_k)
    grid = (N_pad // TM, R, N_pad // TK)

    in_specs = [
        # A_r int8 tile (relation dim squeezed away)
        pl.BlockSpec((pl.Squeezed(), TM, TK), lambda i, r, k: (r, i, k)),
        # MSG_r tile read straight from the wide projection (no HBM transpose)
        pl.BlockSpec((TK, D_pad), lambda i, r, k: (k, r)),
        # per-row 1/deg scale
        pl.BlockSpec((TM, 1), lambda i, r, k: (i, 0)),
    ]
    args = [adj_i8, msg_wide, inv_deg2d]
    if self_loop:
        # H @ W_self slab (last column block of the wide projection)
        in_specs.append(pl.BlockSpec((TM, D_pad), lambda i, r, k: (i, R)))
        args.append(msg_wide)

    kernel = _make_aggregate_kernel(self_loop, apply_relu)

    out_bytes = jnp.dtype(out_dtype).itemsize
    flops = 2 * R * N_pad * N_pad * D_pad
    bytes_accessed = (R * N_pad * N_pad                     # A (int8)
                      + 2 * (N_pad // TM) * R * N_pad * D_pad  # MSG re-reads
                      + 4 * N_pad                           # inv_deg
                      + (2 * N_pad * D_pad if self_loop else 0)
                      + out_bytes * N_pad * D_pad)          # output

    out = pl.pallas_call(
        kernel,
        out_shape=jax.ShapeDtypeStruct((N_pad, D_pad), out_dtype),
        grid_spec=pltpu.PrefetchScalarGridSpec(
            num_scalar_prefetch=0,
            grid=grid,
            in_specs=in_specs,
            out_specs=pl.BlockSpec((TM, D_pad), lambda i, r, k: (i, 0)),
            scratch_shapes=[pltpu.VMEM((TM, D_pad), jnp.float32)],
        ),
        compiler_params=pltpu.CompilerParams(
            dimension_semantics=("parallel", "arbitrary", "arbitrary"),
            vmem_limit_bytes=56 * 1024 * 1024),
        cost_estimate=pl.CostEstimate(
            flops=flops, transcendentals=0, bytes_accessed=bytes_accessed),
    )(*args)

    if N_pad != N or D_pad != D_out:
        out = out[:N, :D_out]
    return out


# ----------------------------------------------------------------------------
# BaseRGCN structure (build_model / layers / forward) mirrored in JAX.
# ----------------------------------------------------------------------------
class BaseRGCNPallas:
    def __init__(self, num_nodes, h_dim, out_dim, num_rels, num_bases=-1,
                 num_hidden_layers=1, self_loop=False, key=None):
        self.num_nodes = num_nodes
        self.h_dim = h_dim
        self.out_dim = out_dim
        self.num_rels = num_rels
        # TODO(synk): num_bases basis decomposition not implemented (base class
        # leaves the layer abstract; full per-relation weights assumed).
        self.num_bases = num_bases
        self.num_hidden_layers = num_hidden_layers
        self.self_loop = self_loop
        self.key = key if key is not None else jax.random.PRNGKey(0)
        self.build_model()
        self.features = self.create_features()   # base class returns None

    def create_features(self):
        return None

    def build_input_layer(self):
        return None

    def build_output_layer(self):
        return None

    def build_hidden_layer(self, idx):
        # Concrete RGCN layer parameters (deterministic init).
        self.key, k1, k2 = jax.random.split(self.key, 3)
        w_rel = (jax.random.normal(k1, (self.num_rels, self.h_dim, self.h_dim),
                                   dtype=jnp.float32) / jnp.sqrt(self.h_dim))
        w_self = (jax.random.normal(k2, (self.h_dim, self.h_dim),
                                    dtype=jnp.float32) / jnp.sqrt(self.h_dim))
        return (w_rel, w_self)

    def build_model(self):
        self.layers = []
        i2h = self.build_input_layer()
        if i2h is not None:
            self.layers.append(i2h)
        for idx in range(self.num_hidden_layers):
            self.layers.append(self.build_hidden_layer(idx))
        h2o = self.build_output_layer()
        if h2o is not None:
            self.layers.append(h2o)

    def forward(self, g):
        # g: dict with 'h' (N, D) node features and 'adj' (R, N, N) raw 0/1
        # relational adjacency (in-degree normalization applied in-kernel).
        if self.features is not None:
            g['id'] = self.features
        h = g['h']
        raw = g['adj']
        adj_i8 = (raw > 0).astype(jnp.int8)                       # 1-byte A in HBM
        deg = jnp.clip(jnp.sum(raw.astype(jnp.float32), axis=(0, 2)), 1.0, None)
        inv_deg = (1.0 / deg).astype(jnp.float32)
        n_layers = len(self.layers)
        for li, (w_rel, w_self) in enumerate(self.layers):
            out_dtype = jnp.float32 if li == n_layers - 1 else jnp.bfloat16
            h = rgcn_layer_pallas(adj_i8, inv_deg, w_rel, w_self, h,
                                  self_loop=self.self_loop, apply_relu=True,
                                  out_dtype=out_dtype)
            g['h'] = h
        return g.pop('h')


# Pure-JAX reference (mirrors the kernel's bf16 inputs / f32-accumulate flow,
# exact 0/1 adjacency and exact f32 1/deg scaling).
def _ref_forward(adj_raw, layers, h, self_loop=True):
    f32 = jnp.float32
    adj01 = (adj_raw > 0).astype(f32)
    deg = jnp.clip(adj01.sum(axis=(0, 2)), 1.0, None)
    inv_deg = 1.0 / deg
    n_layers = len(layers)
    for li, (w_rel, w_self) in enumerate(layers):
        h_b = h.astype(jnp.bfloat16).astype(f32)
        wr = w_rel.astype(jnp.bfloat16).astype(f32)
        msg = jnp.einsum('nd,rde->rne', h_b, wr, precision='highest')
        msg = msg.astype(jnp.bfloat16).astype(f32)
        agg = jnp.einsum('rij,rjd->id', adj01, msg, precision='highest')
        agg = agg * inv_deg[:, None]
        if self_loop:
            ws = w_self.astype(jnp.bfloat16).astype(f32)
            sl = jnp.dot(h_b, ws, precision='highest')
            sl = sl.astype(jnp.bfloat16).astype(f32)
            agg = agg + sl
        h = jnp.maximum(agg, 0.0)
        if li != n_layers - 1:
            h = h.astype(jnp.bfloat16)
    return h


if __name__ == "__main__":
    key = jax.random.PRNGKey(0)
    num_nodes, h_dim, num_rels = 16, 32, 4

    model = BaseRGCNPallas(num_nodes=num_nodes, h_dim=h_dim, out_dim=h_dim,
                           num_rels=num_rels, num_hidden_layers=1,
                           self_loop=True, key=jax.random.PRNGKey(1))

    k_h, k_a = jax.random.split(key)
    h0 = jax.random.normal(k_h, (num_nodes, h_dim), dtype=jnp.float32)

    # Raw 0/1 dense relational adjacency (normalization handled in-kernel).
    raw = (jax.random.uniform(k_a, (num_rels, num_nodes, num_nodes)) < 0.2)
    raw = raw.astype(jnp.float32)

    g = {'h': h0, 'adj': raw}
    out = model.forward(g)
    out = jax.block_until_ready(out)

    ref = _ref_forward(raw, model.layers, h0, self_loop=True)
    assert out.shape == (num_nodes, h_dim)
    assert jnp.allclose(out, ref, atol=2e-2, rtol=2e-2), \
        float(jnp.max(jnp.abs(out - ref)))

    print("KERNEL_OK")
</pallas_src>

<mosaic_0001>
module attributes {stable_mosaic.version = 11 : i64} {
  func.func @_project_kernel(%arg0: i32, %arg1: i32, %arg2: memref<128x32xbf16, #tpu.memory_space<vmem>>, %arg3: memref<32x640xbf16, #tpu.memory_space<vmem>>, %arg4: memref<128x640xbf16, #tpu.memory_space<vmem>>) attributes {dimension_semantics = [#tpu.dimension_semantics<parallel>, #tpu.dimension_semantics<parallel>], iteration_bounds = array<i64: 1, 1>, scalar_prefetch = 0 : i64, scratch_operands = 0 : i64, tpu.core_type = #tpu.core_type<tc>, window_params = [{transform_indices = @transform_0, window_bounds = array<i64: 128, 32>}, {transform_indices = @transform_1, window_bounds = array<i64: 32, 640>}, {transform_indices = @transform_2, window_bounds = array<i64: 128, 640>}]} {
    %c0 = arith.constant 0 : index
    %c0_0 = arith.constant 0 : index
    %0 = vector.load %arg2[%c0, %c0_0] : memref<128x32xbf16, #tpu.memory_space<vmem>>, vector<128x32xbf16>
    %c0_1 = arith.constant 0 : index
    %c0_2 = arith.constant 0 : index
    %1 = vector.load %arg3[%c0_1, %c0_2] : memref<32x640xbf16, #tpu.memory_space<vmem>>, vector<32x640xbf16>
    %cst = arith.constant dense<0.000000e+00> : vector<128x640xf32>
    %2 = tpu.matmul %0, %1, %cst {dimension_numbers = #tpu.dot_dimension_numbers<[1], [0], [0], [1], [0, 0, 1, 1], [], []>} : vector<128x32xbf16>, vector<32x640xbf16>, vector<128x640xf32> -> vector<128x640xf32>
    %3 = arith.truncf %2 : vector<128x640xf32> to vector<128x640xbf16>
    %c0_3 = arith.constant 0 : index
    %c0_4 = arith.constant 0 : index
    %4 = vector.load %arg4[%c0_3, %c0_4] : memref<128x640xbf16, #tpu.memory_space<vmem>>, vector<128x640xbf16>
    tpu.vector_store %arg4[%c0_3, %c0_4], %3 {strides = array<i32>} : memref<128x640xbf16, #tpu.memory_space<vmem>>, vector<128x640xbf16>,
    return
  }
  func.func @transform_0(%arg0: i32, %arg1: i32) -> (i32, i32) {
    %c0_i32 = arith.constant 0 : i32
    %c0_i32_0 = arith.constant 0 : i32
    return %arg0, %c0_i32 : i32, i32
  }
  func.func @transform_1(%arg0: i32, %arg1: i32) -> (i32, i32) {
    %c0_i32 = arith.constant 0 : i32
    %c0_i32_0 = arith.constant 0 : i32
    return %c0_i32, %arg1 : i32, i32
  }
  func.func @transform_2(%arg0: i32, %arg1: i32) -> (i32, i32) {
    %c0_i32 = arith.constant 0 : i32
    return %arg0, %arg1 : i32, i32
  }
}

</mosaic_0001>

<bundles_post_ra>
// kernel: tpu_custom_call.1
= control target key start
LH: loop header
LB: loop body
LE: loop exit
PB: predicated region body
PF: predicated region fallthrough
CT: control target
= control target key end

     0   :  { %v1021_v2 = vmov 0   ;;  %vm133_vm0 = vcmask 261120   ;;  %s1137_s0 = inlined_call_operand.vmem [shape: bf16[128,32], index: 0, kind: input, shape index: {}]   ;;  %s1138_s1 = inlined_call_operand.vmem [shape: bf16[32,640], index: 1, kind: input, shape index: {}]   ;;  %s1139_s2 = inlined_call_operand.hbm [shape: bf16[128,640], index: 2, kind: output, shape index: {}]  }
   0x1   :  { %v977_v0 = vld [vmem:[%s1138_s1 + $0x2c] ss:$20 sps:$4 sm:$0xff]   ;;  %v979_v1 = vld [vmem:[%s1138_s1 + $0x28] ss:$20 sps:$4 sm:$0xff]   ;;  %190 = vmatprep.mubr.bf16.mxu0 %v1021_v2  ;;  %250 = vmatprep.mubr.bf16.mxu1 %v1021_v2  ;;  %v980_v3 = vld [vmem:[%s1138_s1 + $0x4] ss:$20 sps:$4 sm:$0xff]  }
   0x2   :  { %170 = vmatprep.subr.bf16.mxu0 %v977_v0  ;;  %969 = vmatprep.subr.bf16.mxu1 %v977_v0  ;;  %v982_v4 = vld [vmem:[%s1138_s1] ss:$20 sps:$4 sm:$0xff]   ;;  %v988_v8 = vld [vmem:[%s1138_s1 + $0x38] ss:$20 sps:$4 sm:$0xff]   ;;  %v985_v9 = vld [vmem:[%s1138_s1 + $0x30] ss:$20 sps:$4 sm:$0xff]  }
   0x3   :  { %171 = vmatpush1.bf16.msra.mxu0 %v979_v1  ;;  %971 = vmatpush1.bf16.msra.mxu1 %v979_v1  ;;  %v983_v5 = vld [vmem:[%s1137_s0] sm:$0xff]   ;;  %v984_v6 = vld [vmem:[%s1137_s0 + $0x30] sm:$0xff]   ;;  %v991_v11 = vld [vmem:[%s1138_s1 + $0x8] ss:$20 sps:$4 sm:$0xff]  }
   0x4   :  { %172 = vmatprep.subr.bf16.mxu0 %v980_v3  ;;  %970 = vmatprep.subr.bf16.mxu1 %v980_v3  ;;  %v987_v7 = vld [vmem:[%s1138_s1 + $0x34] ss:$20 sps:$4 sm:$0xff]   ;;  %v993_v10 = vld [vmem:[%s1138_s1 + $0xc] ss:$20 sps:$4 sm:$0xff]   ;;  %v996_v13 = vld [vmem:[%s1138_s1 + $0x10] ss:$20 sps:$4 sm:$0xff]  }
   0x5   :  { %v989_v12 = vld [vmem:[%s1137_s0 + $0x8] sm:$0xff]   ;;  %v990_v14 = vld [vmem:[%s1137_s0 + $0x38] sm:$0xff]  }
   0x7   :  { %173 = vmatpush1.bf16.msra.mxu0 %v982_v4  ;;  %972 = vmatpush1.bf16.msra.mxu1 %v982_v4 }
   0x8   :  { %283 = vmatprep.subr.bf16.mxu1 %v987_v7  ;;  %949 = vmatprep.subr.bf16.mxu0 %v988_v8 }
   0xa   :  { %819 = vmatmul.mubr.msk.bf16.vlgmr.msra.gmra.mxu0 %vm133_vm0, %v983_v5  ;;  %825 = vmatmul.mubr.msk.bf16.vlgmr.msra.gmra.mxu1 %vm133_vm0, %v984_v6 }
   0xb   :  { %284 = vmatpush1.bf16.msra.mxu1 %v985_v9  ;;  %950 = vmatpush3.bf16.msra.mxu0 %v988_v8 }
   0xc   :  { %200 = vmatprep.mubr.bf16.mxu0 %v1021_v2  ;;  %260 = vmatprep.mubr.bf16.mxu1 %v1021_v2 }
   0xd   :  { %285 = vmatprep.subr.bf16.mxu1 %v993_v10  ;;  %951 = vmatprep.subr.bf16.mxu0 %v996_v13 }
   0xf   :  { %286 = vmatpush1.bf16.msra.mxu1 %v991_v11 }
  0x10   :  { %7 = vsyncpa [#allocation3], 0  ;;  %952 = vmatpush3.bf16.msra.mxu0 %v996_v13  ;;  %v994_v15 = vld [vmem:[%s1137_s0 + $0x10] sm:$0xff]   ;;  %v995_v16 = vld [vmem:[%s1137_s0 + $0x18] sm:$0xff]  }
  0x11   :  { %v997_v17 = vld [vmem:[%s1137_s0 + $0x20] sm:$0xff]   ;;  %v998_v18 = vld [vmem:[%s1137_s0 + $0x28] sm:$0xff]   ;;  %s1022_s0 = smov [#allocation2]  }
  0x12   :  { %820 = vmatmul.mubr.msk.bf16.gmra.mxu0 %vm133_vm0, %v989_v12  ;;  %826 = vmatmul.mubr.msk.bf16.gmra.mxu1 %vm133_vm0, %v990_v14  ;;  %s790_s16 = sshll.u32 %s1022_s0, 4  ;;  %s791_s16 = int_to_ptr.vmem [resolvable:$true] %s790_s16 }
  0x13   :  { %210 = vmatprep.mubr.bf16.mxu0 %v1021_v2  ;;  %303 = vmatprep.mubr.bf16.mxu1 %v1021_v2  ;;  %s999_s17 = scalar_lea.vmem %s791_s16, 5120  ;;  %p1004_p1 = scmp.lt.s32.totalorder %s791_s16, %s791_s16 }
  0x14   :  { %p1000_p0 = scmp.ne.s32.totalorder %s791_s16, %s999_s17  ;;  %p1005_p2 = scmp.lt.s32.totalorder %s999_s17, %s999_s17 }
  0x16   :  { %p1006_p3 = por %p1005_p2, %p1004_p1 }
  0x18   :  { %p1007_p4 = pnand %p1006_p3, %p1000_p0 }
  0x1a   :  { %821 = vmatmul.mubr.msk.bf16.gmra.mxu0 %vm133_vm0, %v994_v15  ;;  %827 = vmatmul.mubr.msk.bf16.vlgmr.msra.gmra.mxu1 %vm133_vm0, %v983_v5 }
  0x1b   :  { %220 = vmatprep.mubr.bf16.mxu0 %v1021_v2  ;;  %313 = vmatprep.mubr.bf16.mxu1 %v1021_v2 }
  0x22   :  { %822 = vmatmul.mubr.msk.bf16.gmra.mxu0 %vm133_vm0, %v995_v16  ;;  %828 = vmatmul.mubr.msk.bf16.gmra.mxu1 %vm133_vm0, %v989_v12 }
  0x23   :  { %230 = vmatprep.mubr.bf16.mxu0 %v1021_v2  ;;  %323 = vmatprep.mubr.bf16.mxu1 %v1021_v2 }
  0x2a   :  { %823 = vmatmul.mubr.msk.bf16.gmra.mxu0 %vm133_vm0, %v997_v17  ;;  %829 = vmatmul.mubr.msk.bf16.gmra.mxu1 %vm133_vm0, %v994_v15 }
  0x2b   :  { %240 = vmatprep.mubr.bf16.mxu0 %v1021_v2  ;;  %333 = vmatprep.mubr.bf16.mxu1 %v1021_v2 }
  0x32   :  { %824 = vmatmul.mubr.msk.bf16.gmra.mxu0 %vm133_vm0, %v998_v18  ;;  %830 = vmatmul.mubr.msk.bf16.gmra.mxu1 %vm133_vm0, %v995_v16 }
  0x33   :  { %343 = vmatprep.mubr.bf16.mxu1 %v1021_v2  ;;  %953 = vmatprep.mubr.msk.bf16.mxu0 %vm133_vm0, %v983_v5 }
  0x3a   :  { %831 = vmatmul.mubr.msk.bf16.gmra.mxu1 %vm133_vm0, %v997_v17  ;;  %954 = vmatmul.mubr.msk.bf16.vlgmr.msra.gmra.mxu0 %vm133_vm0, %v989_v12 }
  0x3b   :  { %353 = vmatprep.mubr.bf16.mxu1 %v1021_v2  ;;  %957 = vmatprep.mubr.msk.bf16.mxu0 %vm133_vm0, %v994_v15 }
  0x42   :  { %832 = vmatmul.mubr.msk.bf16.gmra.mxu1 %vm133_vm0, %v998_v18  ;;  %958 = vmatmul.mubr.msk.bf16.gmra.mxu0 %vm133_vm0, %v995_v16 }
  0x43   :  { %363 = vmatprep.mubr.bf16.mxu1 %v1021_v2  ;;  %961 = vmatprep.mubr.msk.bf16.mxu0 %vm133_vm0, %v997_v17 }
  0x4a   :  { %833 = vmatmul.mubr.msk.bf16.gmra.mxu1 %vm133_vm0, %v984_v6  ;;  %962 = vmatmul.mubr.msk.bf16.gmra.mxu0 %vm133_vm0, %v998_v18 }
  0x4b   :  { %373 = vmatprep.mubr.bf16.mxu1 %v1021_v2  ;;  %965 = vmatprep.mubr.msk.bf16.mxu0 %vm133_vm0, %v984_v6 }
  0x52   :  { %834 = vmatmul.mubr.msk.bf16.gmra.mxu1 %vm133_vm0, %v990_v14  ;;  %966 = vmatmul.mubr.msk.bf16.gmra.mxu0 %vm133_vm0, %v990_v14 }
  0xca   :  { %v192_v19 = vpop.f32.mrf.mxu0  ;;  %v252_v20 = vpop.f32.mrf.mxu1 }
  0xcc   :  { %v194_v21 = vpop.f32.mrf.mxu0  ;;  %v254_v22 = vpop.f32.mrf.mxu1 }
  0xcd   :  { %v891_v23 = vpack.c.bf16 %v194_v21, %v192_v19  ;;  %v927_v24 = vpack.c.bf16 %v254_v22, %v252_v20 }
  0xce   :  { %v196_v25 = vpop.f32.mrf.mxu0  ;;  %v256_v26 = vpop.f32.mrf.mxu1 }
  0xcf   :  { %737 = vst [vmem:[#allocation2] sm:$0xff] %v891_v23  ;;  %773 = vst [vmem:[#allocation2 + $0xf0] sm:$0xff] %v927_v24 }
  0xd0   :  { %v198_v27 = vpop.f32.mrf.mxu0  ;;  %v258_v28 = vpop.f32.mrf.mxu1 }
  0xd1   :  { %v894_v29 = vpack.c.bf16 %v198_v27, %v196_v25  ;;  %v930_v30 = vpack.c.bf16 %v258_v28, %v256_v26 }
  0xd2   :  { %v202_v31 = vpop.f32.mrf.mxu0  ;;  %v262_v32 = vpop.f32.mrf.mxu1 }
  0xd3   :  { %740 = vst [vmem:[#allocation2 + $0x14] sm:$0xff] %v894_v29  ;;  %776 = vst [vmem:[#allocation2 + $0x104] sm:$0xff] %v930_v30 }
  0xd4   :  { %v204_v33 = vpop.f32.mrf.mxu0  ;;  %v264_v34 = vpop.f32.mrf.mxu1 }
  0xd5   :  { %v897_v35 = vpack.c.bf16 %v204_v33, %v202_v31  ;;  %v933_v36 = vpack.c.bf16 %v264_v34, %v262_v32 }
  0xd6   :  { %v206_v37 = vpop.f32.mrf.mxu0  ;;  %v266_v38 = vpop.f32.mrf.mxu1 }
  0xd7   :  { %743 = vst [vmem:[#allocation2 + $0x28] sm:$0xff] %v897_v35  ;;  %779 = vst [vmem:[#allocation2 + $0x118] sm:$0xff] %v933_v36 }
  0xd8   :  { %v208_v39 = vpop.f32.mrf.mxu0  ;;  %v268_v40 = vpop.f32.mrf.mxu1 }
  0xd9   :  { %v900_v41 = vpack.c.bf16 %v208_v39, %v206_v37  ;;  %v936_v42 = vpack.c.bf16 %v268_v40, %v266_v38 }
  0xda   :  { %v212_v43 = vpop.f32.mrf.mxu0  ;;  %v305_v44 = vpop.f32.mrf.mxu1 }
  0xdb   :  { %746 = vst [vmem:[#allocation2 + $0x3c] sm:$0xff] %v900_v41  ;;  %782 = vst [vmem:[#allocation2 + $0x12c] sm:$0xff] %v936_v42 }
  0xdc   :  { %v214_v45 = vpop.f32.mrf.mxu0  ;;  %v307_v46 = vpop.f32.mrf.mxu1 }
  0xdd   :  { %v903_v47 = vpack.c.bf16 %v214_v45, %v212_v43  ;;  %v892_v48 = vpack.c.bf16 %v307_v46, %v305_v44 }
  0xde   :  { %v216_v49 = vpop.f32.mrf.mxu0  ;;  %v309_v50 = vpop.f32.mrf.mxu1 }
  0xdf   :  { %749 = vst [vmem:[#allocation2 + $0x50] sm:$0xff] %v903_v47  ;;  %738 = vst [vmem:[#allocation2 + $0x8] sm:$0xff] %v892_v48 }
  0xe0   :  { %v218_v51 = vpop.f32.mrf.mxu0  ;;  %v311_v52 = vpop.f32.mrf.mxu1 }
  0xe1   :  { %v906_v53 = vpack.c.bf16 %v218_v51, %v216_v49  ;;  %v895_v54 = vpack.c.bf16 %v311_v52, %v309_v50 }
  0xe2   :  { %v222_v55 = vpop.f32.mrf.mxu0  ;;  %v315_v56 = vpop.f32.mrf.mxu1 }
  0xe3   :  { %752 = vst [vmem:[#allocation2 + $0x64] sm:$0xff] %v906_v53  ;;  %741 = vst [vmem:[#allocation2 + $0x1c] sm:$0xff] %v895_v54 }
  0xe4   :  { %v224_v57 = vpop.f32.mrf.mxu0  ;;  %v317_v58 = vpop.f32.mrf.mxu1 }
  0xe5   :  { %v909_v59 = vpack.c.bf16 %v224_v57, %v222_v55  ;;  %v898_v60 = vpack.c.bf16 %v317_v58, %v315_v56 }
  0xe6   :  { %v226_v61 = vpop.f32.mrf.mxu0  ;;  %v319_v62 = vpop.f32.mrf.mxu1 }
  0xe7   :  { %755 = vst [vmem:[#allocation2 + $0x78] sm:$0xff] %v909_v59  ;;  %744 = vst [vmem:[#allocation2 + $0x30] sm:$0xff] %v898_v60 }
  0xe8   :  { %v228_v63 = vpop.f32.mrf.mxu0  ;;  %v321_v0 = vpop.f32.mrf.mxu1 }
  0xe9   :  { %v912_v1 = vpack.c.bf16 %v228_v63, %v226_v61  ;;  %v901_v2 = vpack.c.bf16 %v321_v0, %v319_v62 }
  0xea   :  { %v232_v3 = vpop.f32.mrf.mxu0  ;;  %v325_v4 = vpop.f32.mrf.mxu1 }
  0xeb   :  { %758 = vst [vmem:[#allocation2 + $0x8c] sm:$0xff] %v912_v1  ;;  %747 = vst [vmem:[#allocation2 + $0x44] sm:$0xff] %v901_v2 }
  0xec   :  { %v234_v5 = vpop.f32.mrf.mxu0  ;;  %v327_v6 = vpop.f32.mrf.mxu1 }
  0xed   :  { %v915_v7 = vpack.c.bf16 %v234_v5, %v232_v3  ;;  %v904_v8 = vpack.c.bf16 %v327_v6, %v325_v4 }
  0xee   :  { %v236_v9 = vpop.f32.mrf.mxu0  ;;  %v329_v10 = vpop.f32.mrf.mxu1 }
  0xef   :  { %761 = vst [vmem:[#allocation2 + $0xa0] sm:$0xff] %v915_v7  ;;  %750 = vst [vmem:[#allocation2 + $0x58] sm:$0xff] %v904_v8 }
  0xf0   :  { %v238_v11 = vpop.f32.mrf.mxu0  ;;  %v331_v12 = vpop.f32.mrf.mxu1 }
  0xf1   :  { %v918_v13 = vpack.c.bf16 %v238_v11, %v236_v9  ;;  %v907_v14 = vpack.c.bf16 %v331_v12, %v329_v10 }
  0xf2   :  { %v242_v15 = vpop.f32.mrf.mxu0  ;;  %v335_v16 = vpop.f32.mrf.mxu1 }
  0xf3   :  { %764 = vst [vmem:[#allocation2 + $0xb4] sm:$0xff] %v918_v13  ;;  %753 = vst [vmem:[#allocation2 + $0x6c] sm:$0xff] %v907_v14 }
  0xf4   :  { %v244_v17 = vpop.f32.mrf.mxu0  ;;  %v337_v18 = vpop.f32.mrf.mxu1 }
  0xf5   :  { %v921_v19 = vpack.c.bf16 %v244_v17, %v242_v15  ;;  %v910_v20 = vpack.c.bf16 %v337_v18, %v335_v16 }
  0xf6   :  { %v246_v21 = vpop.f32.mrf.mxu0  ;;  %v339_v22 = vpop.f32.mrf.mxu1 }
  0xf7   :  { %767 = vst [vmem:[#allocation2 + $0xc8] sm:$0xff] %v921_v19  ;;  %756 = vst [vmem:[#allocation2 + $0x80] sm:$0xff] %v910_v20 }
  0xf8   :  { %v248_v23 = vpop.f32.mrf.mxu0  ;;  %v341_v24 = vpop.f32.mrf.mxu1 }
  0xf9   :  { %v924_v25 = vpack.c.bf16 %v248_v23, %v246_v21  ;;  %v913_v26 = vpack.c.bf16 %v341_v24, %v339_v22 }
  0xfa   :  { %v345_v27 = vpop.f32.mrf.mxu1  ;;  %v955_v28 = vpop.f32.mrf.mxu0 }
  0xfb   :  { %770 = vst [vmem:[#allocation2 + $0xdc] sm:$0xff] %v924_v25  ;;  %759 = vst [vmem:[#allocation2 + $0x94] sm:$0xff] %v913_v26  ;;  %v899_v29 = vpack.c.bf16 %v955_v28, %v955_v28 }
  0xfc   :  { %v347_v30 = vpop.f32.mrf.mxu1  ;;  %v418_v31 = vpop.f32.mrf.mxu0 }
  0xfd   :  { %745 = vst [vmem:[#allocation2 + $0x38] sm:$0xf] %v899_v29  ;;  %v916_v32 = vpack.c.bf16 %v347_v30, %v345_v27  ;;  %v893_v33 = vpack.c.bf16 %v418_v31, %v418_v31 }
  0xfe   :  { %v349_v34 = vpop.f32.mrf.mxu1  ;;  %v956_v35 = vpop.f32.mrf.mxu0 }
  0xff   :  { %762 = vst [vmem:[#allocation2 + $0xa8] sm:$0xff] %v916_v32  ;;  %739 = vst [vmem:[#allocation2 + $0x10] sm:$0xf] %v893_v33  ;;  %v902_v36 = vpack.c.bf16 %v956_v35, %v956_v35 }
 0x100   :  { %v351_v37 = vpop.f32.mrf.mxu1  ;;  %v421_v38 = vpop.f32.mrf.mxu0 }
 0x101   :  { %748 = vst [vmem:[#allocation2 + $0x4c] sm:$0xf] %v902_v36  ;;  %v919_v39 = vpack.c.bf16 %v351_v37, %v349_v34  ;;  %v896_v40 = vpack.c.bf16 %v421_v38, %v421_v38 }
 0x102   :  { %v355_v41 = vpop.f32.mrf.mxu1  ;;  %v959_v42 = vpop.f32.mrf.mxu0 }
 0x103   :  { %765 = vst [vmem:[#allocation2 + $0xbc] sm:$0xff] %v919_v39  ;;  %742 = vst [vmem:[#allocation2 + $0x24] sm:$0xf] %v896_v40  ;;  %v911_v43 = vpack.c.bf16 %v959_v42, %v959_v42 }
 0x104   :  { %v357_v44 = vpop.f32.mrf.mxu1  ;;  %v434_v45 = vpop.f32.mrf.mxu0 }
 0x105   :  { %757 = vst [vmem:[#allocation2 + $0x88] sm:$0xf] %v911_v43  ;;  %v922_v46 = vpack.c.bf16 %v357_v44, %v355_v41  ;;  %v905_v47 = vpack.c.bf16 %v434_v45, %v434_v45 }
 0x106   :  { %v359_v48 = vpop.f32.mrf.mxu1  ;;  %v960_v49 = vpop.f32.mrf.mxu0 }
 0x107   :  { %768 = vst [vmem:[#allocation2 + $0xd0] sm:$0xff] %v922_v46  ;;  %751 = vst [vmem:[#allocation2 + $0x60] sm:$0xf] %v905_v47  ;;  %v914_v50 = vpack.c.bf16 %v960_v49, %v960_v49 }
 0x108   :  { %v361_v51 = vpop.f32.mrf.mxu1  ;;  %v437_v52 = vpop.f32.mrf.mxu0 }
 0x109   :  { %760 = vst [vmem:[#allocation2 + $0x9c] sm:$0xf] %v914_v50  ;;  %v925_v53 = vpack.c.bf16 %v361_v51, %v359_v48  ;;  %v908_v54 = vpack.c.bf16 %v437_v52, %v437_v52 }
 0x10a   :  { %v365_v55 = vpop.f32.mrf.mxu1  ;;  %v963_v56 = vpop.f32.mrf.mxu0 }
 0x10b   :  { %771 = vst [vmem:[#allocation2 + $0xe4] sm:$0xff] %v925_v53  ;;  %754 = vst [vmem:[#allocation2 + $0x74] sm:$0xf] %v908_v54  ;;  %v923_v57 = vpack.c.bf16 %v963_v56, %v963_v56 }
 0x10c   :  { %v367_v58 = vpop.f32.mrf.mxu1  ;;  %v450_v59 = vpop.f32.mrf.mxu0 }
 0x10d   :  { %769 = vst [vmem:[#allocation2 + $0xd8] sm:$0xf] %v923_v57  ;;  %v928_v60 = vpack.c.bf16 %v367_v58, %v365_v55  ;;  %v917_v61 = vpack.c.bf16 %v450_v59, %v450_v59 }
 0x10e   :  { %v369_v62 = vpop.f32.mrf.mxu1  ;;  %v964_v63 = vpop.f32.mrf.mxu0 }
 0x10f   :  { %774 = vst [vmem:[#allocation2 + $0xf8] sm:$0xff] %v928_v60  ;;  %763 = vst [vmem:[#allocation2 + $0xb0] sm:$0xf] %v917_v61  ;;  %v926_v0 = vpack.c.bf16 %v964_v63, %v964_v63 }
 0x110   :  { %v371_v1 = vpop.f32.mrf.mxu1  ;;  %v453_v2 = vpop.f32.mrf.mxu0 }
 0x111   :  { %772 = vst [vmem:[#allocation2 + $0xec] sm:$0xf] %v926_v0  ;;  %v931_v3 = vpack.c.bf16 %v371_v1, %v369_v62  ;;  %v920_v4 = vpack.c.bf16 %v453_v2, %v453_v2 }
 0x112   :  { %v375_v5 = vpop.f32.mrf.mxu1  ;;  %v967_v6 = vpop.f32.mrf.mxu0 }
 0x113   :  { %777 = vst [vmem:[#allocation2 + $0x10c] sm:$0xff] %v931_v3  ;;  %766 = vst [vmem:[#allocation2 + $0xc4] sm:$0xf] %v920_v4  ;;  %v935_v7 = vpack.c.bf16 %v967_v6, %v967_v6 }
 0x114   :  { %v377_v8 = vpop.f32.mrf.mxu1  ;;  %v466_v9 = vpop.f32.mrf.mxu0 }
 0x115   :  { %781 = vst [vmem:[#allocation2 + $0x128] sm:$0xf] %v935_v7  ;;  %v934_v10 = vpack.c.bf16 %v377_v8, %v375_v5  ;;  %v929_v11 = vpack.c.bf16 %v466_v9, %v466_v9 }
 0x116   :  { %v379_v12 = vpop.f32.mrf.mxu1  ;;  %v968_v13 = vpop.f32.mrf.mxu0 }
 0x117   :  { %780 = vst [vmem:[#allocation2 + $0x120] sm:$0xff] %v934_v10  ;;  %775 = vst [vmem:[#allocation2 + $0x100] sm:$0xf] %v929_v11  ;;  %v938_v14 = vpack.c.bf16 %v968_v13, %v968_v13 }
 0x118   :  { %v381_v15 = vpop.f32.mrf.mxu1  ;;  %v469_v16 = vpop.f32.mrf.mxu0 }
 0x119   :  { %784 = vst [vmem:[#allocation2 + $0x13c] sm:$0xf] %v938_v14  ;;  %v937_v17 = vpack.c.bf16 %v381_v15, %v379_v12  ;;  %v932_v18 = vpack.c.bf16 %v469_v16, %v469_v16 }
 0x11b   :  { %783 = vst [vmem:[#allocation2 + $0x134] sm:$0xff] %v937_v17  ;;  %778 = vst [vmem:[#allocation2 + $0x114] sm:$0xf] %v932_v18 }
 0x11c   :  { %1010 = shalt.err (!%p1007_p4)
}
 0x11d   :  { %s1023_s18 = smov 320   ;;  %s1024_s19 = smov 20  }
 0x11e   :  { %796 = dma.vmem_to_hbm [thread:$0]  %s791_s16, 5120, %s1139_s2, [#allocation3], %s1023_s18, %s1023_s18, %s1024_s19  }
 0x11f   :  { %1019 = dma.done.wait [#allocation3], 5120  }
 0x120   :  { %1020 = vsyncadd [#allocation3], 4294962176 }
 0x121   :  { %800 = vsyncpa [#allocation3], 1 }

</bundles_post_ra>
